<compile_context>
chip_gen: v7x
topology: tpu7x:2x2x1
jax: 0.10.0
libtpu: 0.0.40
codegen_flags: <defaults>
</compile_context>

<pallas_src>
import functools

import jax
import jax.numpy as jnp
from jax import lax
from jax.experimental import pallas as pl
from jax.experimental.pallas import tpu as pltpu


def _round_up(n, m):
    return ((n + m - 1) // m) * m


# --------------------------------------------------------------------------
# Kernels
# --------------------------------------------------------------------------
def _psi_kernel_blocked(x_ref, w1_ref, b1_ref, w2_ref, b2_ref, out_ref, *,
                        nc, sm_width, elu_lo, elu_hi,
                        std_lo_rel, std_hi_rel, n_pad):
    """Fused forward for a (tb, input_ndims) batch tile, lane-block restricted.

    Column layout of y / out (set up in pack_params):
        [ mix(nc) | reward(1) | mean(md) | std(md) | zero-pad ]
    Softmax touches only lanes [0:sm_width] (one 128-lane block for nc<=128);
    ELU touches only lanes [elu_lo:elu_hi] (the aligned blocks carrying std).
    All other lanes are stored pass-through.  All stores are 128-lane-aligned.
    """
    eps = 1e-6

    x = x_ref[...]
    # Fused first layer (reward + distribution branches share LHS x).
    h = jnp.dot(x, w1_ref[...], preferred_element_type=jnp.float32) + b1_ref[...]
    h = jnp.maximum(h, 0.0)
    # Fused heads: single full-width MXU matmul + one bias add.
    y = jnp.dot(h, w2_ref[...], preferred_element_type=jnp.float32) + b2_ref[...]

    # ---- softmax over the mixture lanes: first 128-lane block only ----
    y_sm = y[:, 0:sm_width]
    col_sm = lax.broadcasted_iota(jnp.int32, (1, sm_width), 1)
    mix_mask = col_sm < nc
    logits = jnp.where(mix_mask, y_sm, jnp.float32(-1e30))
    m = jnp.max(logits, axis=-1, keepdims=True)
    e = jnp.exp(logits - m)
    denom = jnp.sum(e, axis=-1, keepdims=True)
    sm = e * pl.reciprocal(denom, approx=False)
    out_ref[:, 0:sm_width] = jnp.where(mix_mask, sm, y_sm)

    # ---- pass-through middle region (reward / mean lanes), if any ----
    if elu_lo > sm_width:
        out_ref[:, sm_width:elu_lo] = y[:, sm_width:elu_lo]

    # ---- ELU(y)+1+eps on the std-bearing aligned blocks only ----
    y_e = y[:, elu_lo:elu_hi]
    col_e = lax.broadcasted_iota(jnp.int32, (1, elu_hi - elu_lo), 1)
    std_mask = (col_e >= std_lo_rel) & (col_e < std_hi_rel)
    # min() clamp keeps exp() finite on the branch that gets discarded.
    elu1 = jnp.where(y_e > 0.0, y_e, jnp.exp(jnp.minimum(y_e, 0.0)) - 1.0) + (1.0 + eps)
    out_ref[:, elu_lo:elu_hi] = jnp.where(std_mask, elu1, y_e)

    # ---- trailing pass-through, if any ----
    if elu_hi < n_pad:
        out_ref[:, elu_hi:n_pad] = y[:, elu_hi:n_pad]


def _psi_kernel_masked(x_ref, w1_ref, b1_ref, w2_ref, b2_ref, out_ref, *,
                       mix_end, std_off, std_end, n_pad):
    """General fallback (full-width masks) for tiny head widths where the std
    block cannot be separated from the softmax block on 128-lane boundaries."""
    eps = 1e-6
    x = x_ref[...]
    h = jnp.maximum(
        jnp.dot(x, w1_ref[...], preferred_element_type=jnp.float32) + b1_ref[...], 0.0)
    y = jnp.dot(h, w2_ref[...], preferred_element_type=jnp.float32) + b2_ref[...]

    col = lax.broadcasted_iota(jnp.int32, (1, n_pad), 1)      # (1, n_pad), broadcast
    mix_mask = col < mix_end
    std_mask = (col >= std_off) & (col < std_end)

    elu1 = jnp.where(y > 0.0, y, jnp.exp(jnp.minimum(y, 0.0)) - 1.0) + (1.0 + eps)

    logits = jnp.where(mix_mask, y, jnp.float32(-1e30))
    m = jnp.max(logits, axis=-1, keepdims=True)
    e = jnp.exp(logits - m)
    denom = jnp.sum(e, axis=-1, keepdims=True)
    sm = e * pl.reciprocal(denom, approx=False)

    out_ref[...] = jnp.where(std_mask, elu1, jnp.where(mix_mask, sm, y))


# --------------------------------------------------------------------------
# Parameter fusion (done ONCE, not per call)
# --------------------------------------------------------------------------
def pack_params(p):
    """Fuse the six Linear layers into two block matmuls with the
    lane-friendly head order [mix | reward | mean | std | pad]."""
    hidden = p["w1r"].shape[1]
    md = p["wm"].shape[1]          # obs_latent_space_size * num_components
    nc = p["wx"].shape[1]          # num_components

    reward_off = nc
    mean_off = nc + 1
    std_off = nc + 1 + md
    std_end = nc + 1 + 2 * md
    n_total = std_end
    n_pad = max(_round_up(n_total, 128), 128)

    w1 = jnp.concatenate([p["w1r"], p["w1d"]], axis=1)     # (in, 2*hidden)
    b1 = jnp.concatenate([p["b1r"], p["b1d"]], axis=1)     # (1, 2*hidden)

    w2 = jnp.zeros((2 * hidden, n_pad), jnp.float32)
    w2 = w2.at[hidden:, 0:nc].set(p["wx"])                  # mix
    w2 = w2.at[:hidden, reward_off:reward_off + 1].set(p["w2r"])   # reward
    w2 = w2.at[hidden:, mean_off:std_off].set(p["wm"])      # mean
    w2 = w2.at[hidden:, std_off:std_end].set(p["ws"])       # std

    b2 = jnp.zeros((1, n_pad), jnp.float32)
    b2 = b2.at[:, 0:nc].set(p["bx"])
    b2 = b2.at[:, reward_off:reward_off + 1].set(p["b2r"])
    b2 = b2.at[:, mean_off:std_off].set(p["bm"])
    b2 = b2.at[:, std_off:std_end].set(p["bs"])

    dims = dict(mix_off=0, mix_end=nc, reward_off=reward_off, mean_off=mean_off,
                std_off=std_off, std_end=std_end, n_total=n_total, n_pad=n_pad)
    return dict(w1=w1, b1=b1, w2=w2, b2=b2, dims=dims)


# --------------------------------------------------------------------------
# Batch tiling heuristic
# --------------------------------------------------------------------------
def _choose_tb(B):
    """Batch tile: small batches get one tight block; mid-size batches are
    split into two ~equal tiles (>=2 grid steps so v7x's two TensorCores both
    work); large batches use the biggest tile in {1024,...,128} that keeps
    padded-row waste <= ~12.5%.  Max 1024 rows keeps VMEM use well under the
    default scoped limit on v5e/v6e/v7x."""
    B8 = _round_up(max(B, 1), 8)
    if B8 <= 64:
        return B8
    if B8 <= 2048:
        return min(1024, _round_up(-(-B8 // 2), 8))
    for tb in (1024, 512, 256, 128):
        if (_round_up(B, tb) - B) / B <= 0.125:
            return tb
    return 128


# --------------------------------------------------------------------------
# Forward wrappers
# --------------------------------------------------------------------------
def psi_forward_slab(x, fused):
    """Run the fused kernel once; return the padded lane-dense slab
    (b_pad, n_pad) with columns [mix | reward | mean | std | pad].
    Perf-sensitive consumers should slice heads out of this slab inside their
    own jit (see fused['dims']) instead of materializing four arrays."""
    w1, b1, w2, b2 = fused["w1"], fused["b1"], fused["w2"], fused["b2"]
    d = fused["dims"]
    input_ndims = w1.shape[0]
    n_pad = d["n_pad"]
    nc = d["mix_end"]

    B = x.shape[0]
    tb = _choose_tb(B)
    b_pad = _round_up(B, tb)
    if b_pad != B:
        x = jnp.pad(x, ((0, b_pad - B), (0, 0)))

    sm_width = min(_round_up(max(nc, 1), 128), n_pad)
    elu_lo = (d["std_off"] // 128) * 128
    elu_hi = min(_round_up(d["std_end"], 128), n_pad)

    if elu_lo >= sm_width:
        kernel = functools.partial(
            _psi_kernel_blocked, nc=nc, sm_width=sm_width,
            elu_lo=elu_lo, elu_hi=elu_hi,
            std_lo_rel=d["std_off"] - elu_lo, std_hi_rel=d["std_end"] - elu_lo,
            n_pad=n_pad)
        tr_lanes = sm_width + (elu_hi - elu_lo)     # softmax exp + ELU exp lanes
    else:
        kernel = functools.partial(
            _psi_kernel_masked, mix_end=d["mix_end"], std_off=d["std_off"],
            std_end=d["std_end"], n_pad=n_pad)
        tr_lanes = 2 * n_pad

    hidden2 = w1.shape[1]
    flops = 2 * b_pad * (input_ndims * hidden2 + hidden2 * n_pad)
    bytes_accessed = 4 * (b_pad * input_ndims + w1.size + b1.size
                          + w2.size + b2.size + b_pad * n_pad)

    slab = pl.pallas_call(
        kernel,
        out_shape=jax.ShapeDtypeStruct((b_pad, n_pad), jnp.float32),
        grid=(b_pad // tb,),
        in_specs=[
            pl.BlockSpec((tb, input_ndims), lambda i: (i, 0)),   # batch-tiled x
            pl.BlockSpec(w1.shape, lambda i: (0, 0)),            # resident weights
            pl.BlockSpec(b1.shape, lambda i: (0, 0)),
            pl.BlockSpec(w2.shape, lambda i: (0, 0)),
            pl.BlockSpec(b2.shape, lambda i: (0, 0)),
        ],
        out_specs=pl.BlockSpec((tb, n_pad), lambda i: (i, 0)),   # lane-dense slab
        compiler_params=pltpu.CompilerParams(
            dimension_semantics=("parallel",)),
        cost_estimate=pl.CostEstimate(
            flops=flops,
            transcendentals=b_pad * tr_lanes,
            bytes_accessed=bytes_accessed),
    )(x, w1, b1, w2, b2)
    return slab


def psi_net_highdim_kl_forward(x, fused):
    """Module-parity API: returns (reward, mean, std, mix).  Call under jit so
    the head slices fuse; prefer psi_forward_slab for hot paths."""
    slab = psi_forward_slab(x, fused)
    d = fused["dims"]
    B = x.shape[0]
    reward = slab[:B, d["reward_off"]:d["reward_off"] + 1]
    mean = slab[:B, d["mean_off"]:d["std_off"]]
    std = slab[:B, d["std_off"]:d["std_end"]]
    mix = slab[:B, d["mix_off"]:d["mix_end"]]
    return reward, mean, std, mix


# --------------------------------------------------------------------------
# Init + pure-JAX reference
# --------------------------------------------------------------------------
def init_params(key, obs_latent_space_size, num_actions,
                AIS_state_size=5, num_components=20):
    """Deterministic parameter init mirroring the PyTorch Linear shapes.
    Weights stored pre-transposed as (in_features, out_features)."""
    input_ndims = AIS_state_size + num_actions
    hidden = AIS_state_size // 2
    out_md = obs_latent_space_size * num_components

    def lin(k, fan_in, fan_out):
        kw, kb = jax.random.split(k)
        bound = 1.0 / jnp.sqrt(jnp.float32(fan_in))
        w = jax.random.uniform(kw, (fan_in, fan_out), jnp.float32, -bound, bound)
        b = jax.random.uniform(kb, (1, fan_out), jnp.float32, -bound, bound)
        return w, b

    ks = jax.random.split(key, 6)
    w1r, b1r = lin(ks[0], input_ndims, hidden)
    w2r, b2r = lin(ks[1], hidden, 1)
    w1d, b1d = lin(ks[2], input_ndims, hidden)
    wm, bm = lin(ks[3], hidden, out_md)
    ws, bs = lin(ks[4], hidden, out_md)
    wx, bx = lin(ks[5], hidden, num_components)
    return dict(w1r=w1r, b1r=b1r, w2r=w2r, b2r=b2r,
                w1d=w1d, b1d=b1d,
                wm=wm, bm=bm, ws=ws, bs=bs, wx=wx, bx=bx)


def reference_forward(x, p):
    """Pure-JAX reference reproducing the PyTorch forward."""
    eps = 1e-6
    h_r = jnp.maximum(x @ p["w1r"] + p["b1r"], 0.0)
    reward = h_r @ p["w2r"] + p["b2r"]
    h_d = jnp.maximum(x @ p["w1d"] + p["b1d"], 0.0)
    mean = h_d @ p["wm"] + p["bm"]
    z = h_d @ p["ws"] + p["bs"]
    std = jnp.where(z > 0, z, jnp.exp(jnp.minimum(z, 0.0)) - 1.0) + 1.0 + eps
    mix = jax.nn.softmax(h_d @ p["wx"] + p["bx"], axis=1)
    return reward, mean, std, mix


if __name__ == "__main__":
    # Small shapes consistent with the module:
    #   obs_latent_space_size=8, num_actions=4, AIS_state_size=32, num_components=20
    #   -> input_ndims = 36, hidden = 16, mean/std dim = 160, mix dim = 20
    obs_latent_space_size = 8
    num_actions = 4
    AIS_state_size = 32
    num_components = 20
    batch = 8

    out_md = obs_latent_space_size * num_components

    key = jax.random.PRNGKey(0)
    kx, kp = jax.random.split(key)
    x = jax.random.normal(kx, (batch, AIS_state_size + num_actions), jnp.float32)
    params = init_params(kp, obs_latent_space_size, num_actions,
                         AIS_state_size, num_components)
    fused = pack_params(params)                       # fuse/pad ONCE

    # jit with fused captured as a closure so dims stay static and the head
    # slices fuse with the kernel's consumer inside one XLA program.
    fwd = jax.jit(lambda xb: psi_net_highdim_kl_forward(xb, fused))
    reward, mean, std, mix = fwd(x)
    jax.block_until_ready((reward, mean, std, mix))

    # Correctness check against pure-JAX reference.
    r_ref, m_ref, s_ref, x_ref = reference_forward(x, params)
    assert reward.shape == (batch, 1)
    assert mean.shape == (batch, out_md)
    assert std.shape == (batch, out_md)
    assert mix.shape == (batch, num_components)
    assert jnp.allclose(reward, r_ref, atol=1e-5, rtol=1e-5)
    assert jnp.allclose(mean, m_ref, atol=1e-5, rtol=1e-5)
    assert jnp.allclose(std, s_ref, atol=1e-5, rtol=1e-5)
    assert jnp.allclose(mix, x_ref, atol=1e-5, rtol=1e-5)

    print("KERNEL_OK")
</pallas_src>

<mosaic_0001>
module attributes {stable_mosaic.version = 11 : i64} {
  func.func @_psi_kernel_blocked(%arg0: i32, %arg1: memref<8x36xf32, #tpu.memory_space<vmem>>, %arg2: memref<36x32xf32, #tpu.memory_space<vmem>>, %arg3: memref<1x32xf32, #tpu.memory_space<vmem>>, %arg4: memref<32x384xf32, #tpu.memory_space<vmem>>, %arg5: memref<1x384xf32, #tpu.memory_space<vmem>>, %arg6: memref<8x384xf32, #tpu.memory_space<vmem>>) attributes {dimension_semantics = [#tpu.dimension_semantics<parallel>], iteration_bounds = array<i64: 1>, scalar_prefetch = 0 : i64, scratch_operands = 0 : i64, tpu.core_type = #tpu.core_type<tc>, window_params = [{transform_indices = @transform_0, window_bounds = array<i64: 8, 36>}, {pipeline_mode = #tpu.pipeline_mode<synchronous>, transform_indices = @transform_1, window_bounds = array<i64: 36, 32>}, {pipeline_mode = #tpu.pipeline_mode<synchronous>, transform_indices = @transform_2, window_bounds = array<i64: 1, 32>}, {pipeline_mode = #tpu.pipeline_mode<synchronous>, transform_indices = @transform_3, window_bounds = array<i64: 32, 384>}, {pipeline_mode = #tpu.pipeline_mode<synchronous>, transform_indices = @transform_4, window_bounds = array<i64: 1, 384>}, {transform_indices = @transform_5, window_bounds = array<i64: 8, 384>}]} {
    %c0 = arith.constant 0 : index
    %c0_0 = arith.constant 0 : index
    %0 = vector.load %arg1[%c0, %c0_0] : memref<8x36xf32, #tpu.memory_space<vmem>>, vector<8x36xf32>
    %c0_1 = arith.constant 0 : index
    %c0_2 = arith.constant 0 : index
    %1 = vector.load %arg2[%c0_1, %c0_2] : memref<36x32xf32, #tpu.memory_space<vmem>>, vector<36x32xf32>
    %cst = arith.constant dense<0.000000e+00> : vector<8x32xf32>
    %2 = tpu.matmul %0, %1, %cst {dimension_numbers = #tpu.dot_dimension_numbers<[1], [0], [0], [1], [0, 0, 1, 1], [], []>} : vector<8x36xf32>, vector<36x32xf32>, vector<8x32xf32> -> vector<8x32xf32>
    %c0_3 = arith.constant 0 : index
    %c0_4 = arith.constant 0 : index
    %3 = vector.load %arg3[%c0_3, %c0_4] : memref<1x32xf32, #tpu.memory_space<vmem>>, vector<1x32xf32>
    %4 = vector.broadcast %3 : vector<1x32xf32> to vector<8x32xf32>
    %5 = arith.addf %2, %4 : vector<8x32xf32>
    %cst_5 = arith.constant 0.000000e+00 : f32
    %6 = vector.broadcast %cst_5 : f32 to vector<8x32xf32>
    %7 = arith.maximumf %5, %6 : vector<8x32xf32>
    %c0_6 = arith.constant 0 : index
    %c0_7 = arith.constant 0 : index
    %8 = vector.load %arg4[%c0_6, %c0_7] : memref<32x384xf32, #tpu.memory_space<vmem>>, vector<32x384xf32>
    %cst_8 = arith.constant dense<0.000000e+00> : vector<8x384xf32>
    %9 = tpu.matmul %7, %8, %cst_8 {dimension_numbers = #tpu.dot_dimension_numbers<[1], [0], [0], [1], [0, 0, 1, 1], [], []>} : vector<8x32xf32>, vector<32x384xf32>, vector<8x384xf32> -> vector<8x384xf32>
    %c0_9 = arith.constant 0 : index
    %c0_10 = arith.constant 0 : index
    %10 = vector.load %arg5[%c0_9, %c0_10] : memref<1x384xf32, #tpu.memory_space<vmem>>, vector<1x384xf32>
    %11 = vector.broadcast %10 : vector<1x384xf32> to vector<8x384xf32>
    %12 = arith.addf %9, %11 : vector<8x384xf32>
    %13 = vector.extract_strided_slice %12 {offsets = [0, 0], sizes = [8, 128], strides = [1, 1]} : vector<8x384xf32> to vector<8x128xf32>
    %14 = tpu.iota {dimensions = array<i32: 1>} : vector<1x128xi32>
    %c20_i32 = arith.constant 20 : i32
    %15 = vector.broadcast %c20_i32 : i32 to vector<1x128xi32>
    %16 = arith.cmpi slt, %14, %15 : vector<1x128xi32>
    %cst_11 = arith.constant -1.000000e+30 : f32
    %17 = vector.shape_cast %16 : vector<1x128xi1> to vector<1x128xi1>
    %18 = vector.broadcast %17 : vector<1x128xi1> to vector<8x128xi1>
    %19 = vector.broadcast %cst_11 : f32 to vector<8x128xf32>
    %20 = arith.select %18, %13, %19 : vector<8x128xi1>, vector<8x128xf32>
    %cst_12 = arith.constant dense<0xFF800000> : vector<8xf32>
    %21 = vector.multi_reduction <maximumf>, %20, %cst_12 [1] : vector<8x128xf32> to vector<8xf32>
    %22 = vector.shape_cast %21 : vector<8xf32> to vector<8x1xf32>
    %23 = vector.broadcast %22 : vector<8x1xf32> to vector<8x128xf32>
    %24 = arith.subf %20, %23 : vector<8x128xf32>
    %25 = math.exp %24 : vector<8x128xf32>
    %cst_13 = arith.constant dense<0.000000e+00> : vector<8xf32>
    %26 = vector.multi_reduction <add>, %25, %cst_13 [1] : vector<8x128xf32> to vector<8xf32>
    %27 = vector.shape_cast %26 : vector<8xf32> to vector<8x1xf32>
    %28 = tpu.reciprocal %27 : vector<8x1xf32> -> vector<8x1xf32>
    %29 = vector.broadcast %28 : vector<8x1xf32> to vector<8x128xf32>
    %30 = arith.mulf %25, %29 : vector<8x128xf32>
    %31 = vector.shape_cast %16 : vector<1x128xi1> to vector<1x128xi1>
    %32 = vector.broadcast %31 : vector<1x128xi1> to vector<8x128xi1>
    %33 = arith.select %32, %30, %13 : vector<8x128xi1>, vector<8x128xf32>
    %c0_14 = arith.constant 0 : index
    %c0_15 = arith.constant 0 : index
    %34 = vector.load %arg6[%c0_14, %c0_15] : memref<8x384xf32, #tpu.memory_space<vmem>>, vector<8x128xf32>
    tpu.vector_store %arg6[%c0_14, %c0_15], %33 {strides = array<i32>} : memref<8x384xf32, #tpu.memory_space<vmem>>, vector<8x128xf32>,
    %35 = vector.extract_strided_slice %12 {offsets = [0, 128], sizes = [8, 256], strides = [1, 1]} : vector<8x384xf32> to vector<8x256xf32>
    %36 = tpu.iota {dimensions = array<i32: 1>} : vector<1x256xi32>
    %c53_i32 = arith.constant 53 : i32
    %37 = vector.broadcast %c53_i32 : i32 to vector<1x256xi32>
    %38 = arith.cmpi sge, %36, %37 : vector<1x256xi32>
    %c213_i32 = arith.constant 213 : i32
    %39 = vector.broadcast %c213_i32 : i32 to vector<1x256xi32>
    %40 = arith.cmpi slt, %36, %39 : vector<1x256xi32>
    %41 = arith.andi %38, %40 : vector<1x256xi1>
    %cst_16 = arith.constant 0.000000e+00 : f32
    %42 = vector.broadcast %cst_16 : f32 to vector<8x256xf32>
    %43 = arith.cmpf ogt, %35, %42 : vector<8x256xf32>
    %cst_17 = arith.constant 0.000000e+00 : f32
    %44 = vector.broadcast %cst_17 : f32 to vector<8x256xf32>
    %45 = arith.minimumf %35, %44 : vector<8x256xf32>
    %46 = math.exp %45 : vector<8x256xf32>
    %cst_18 = arith.constant 1.000000e+00 : f32
    %47 = vector.broadcast %cst_18 : f32 to vector<8x256xf32>
    %48 = arith.subf %46, %47 : vector<8x256xf32>
    %49 = arith.select %43, %35, %48 : vector<8x256xi1>, vector<8x256xf32>
    %cst_19 = arith.constant 1.00000095 : f32
    %50 = vector.broadcast %cst_19 : f32 to vector<8x256xf32>
    %51 = arith.addf %49, %50 : vector<8x256xf32>
    %52 = vector.shape_cast %41 : vector<1x256xi1> to vector<1x256xi1>
    %53 = vector.broadcast %52 : vector<1x256xi1> to vector<8x256xi1>
    %54 = arith.select %53, %51, %35 : vector<8x256xi1>, vector<8x256xf32>
    %c0_20 = arith.constant 0 : index
    %c128 = arith.constant 128 : index
    %55 = vector.load %arg6[%c0_20, %c128] : memref<8x384xf32, #tpu.memory_space<vmem>>, vector<8x256xf32>
    tpu.vector_store %arg6[%c0_20, %c128], %54 {strides = array<i32>} : memref<8x384xf32, #tpu.memory_space<vmem>>, vector<8x256xf32>,
    return
  }
  func.func @transform_0(%arg0: i32) -> (i32, i32) {
    %c0_i32 = arith.constant 0 : i32
    %c0_i32_0 = arith.constant 0 : i32
    return %arg0, %c0_i32 : i32, i32
  }
  func.func @transform_1(%arg0: i32) -> (i32, i32) {
    %c0_i32 = arith.constant 0 : i32
    %c0_i32_0 = arith.constant 0 : i32
    %c0_i32_1 = arith.constant 0 : i32
    return %c0_i32, %c0_i32_0 : i32, i32
  }
  func.func @transform_2(%arg0: i32) -> (i32, i32) {
    %c0_i32 = arith.constant 0 : i32
    %c0_i32_0 = arith.constant 0 : i32
    %c0_i32_1 = arith.constant 0 : i32
    return %c0_i32, %c0_i32_0 : i32, i32
  }
  func.func @transform_3(%arg0: i32) -> (i32, i32) {
    %c0_i32 = arith.constant 0 : i32
    %c0_i32_0 = arith.constant 0 : i32
    %c0_i32_1 = arith.constant 0 : i32
    return %c0_i32, %c0_i32_0 : i32, i32
  }
  func.func @transform_4(%arg0: i32) -> (i32, i32) {
    %c0_i32 = arith.constant 0 : i32
    %c0_i32_0 = arith.constant 0 : i32
    %c0_i32_1 = arith.constant 0 : i32
    return %c0_i32, %c0_i32_0 : i32, i32
  }
  func.func @transform_5(%arg0: i32) -> (i32, i32) {
    %c0_i32 = arith.constant 0 : i32
    %c0_i32_0 = arith.constant 0 : i32
    return %arg0, %c0_i32 : i32, i32
  }
}

</mosaic_0001>

<bundles_post_ra>
// kernel: _lambda_.1
= control target key start
LH: loop header
LB: loop body
LE: loop exit
PB: predicated region body
PF: predicated region fallthrough
CT: control target
= control target key end

     0   :  { %10 = vsyncpa [#allocation3], 0  ;;  %s622_s0 = inlined_call_operand.hbm [shape: f32[8,36], index: 0, kind: input, shape index: {}]   ;;  %s623_s1 = inlined_call_operand.hbm [shape: f32[36,32], index: 1, kind: input, shape index: {}]   ;;  %s624_s2 = inlined_call_operand.vmem [shape: f32[1,32], index: 2, kind: input, shape index: {}]   ;;  %s625_s3 = inlined_call_operand.hbm [shape: f32[32,384], index: 3, kind: input, shape index: {}]   ;;  %s626_s4 = inlined_call_operand.vmem [shape: f32[1,384], index: 4, kind: input, shape index: {}]   ;;  %s627_s5 = inlined_call_operand.vmem [shape: f32[8,384], index: 5, kind: output, shape index: {}]  }
   0x1   :  { %11 = vsyncpa [#allocation5], 0  ;;  %s527_s18 = smov [#allocation4]   ;;  %s457_s22 = scalar_lea.hbm %s623_s1, 640 }
   0x2   :  { %s27_s19 = sshll.u32 %s527_s18, 4  ;;  %p458_p0 = scmp.ne.s32.totalorder %s623_s1, %s457_s22  ;;  %s28_s19 = int_to_ptr.vmem [resolvable:$true] %s27_s19 }
   0x3   :  { %p461_p1 = scmp.lt.u32.totalorder %s457_s22, %s623_s1 }
   0x5   :  { %p463_p2 = pnand %p461_p1, %p458_p0 }
   0x7   :  { %466 = shalt.err (!%p463_p2)
}
   0x8   :  { %s467_s27 = scalar_lea.vmem %s28_s19, 640  ;;  %p472_p4 = scmp.lt.s32.totalorder %s28_s19, %s28_s19 }
   0x9   :  { %p468_p3 = scmp.ne.s32.totalorder %s28_s19, %s467_s27  ;;  %p473_p5 = scmp.lt.s32.totalorder %s467_s27, %s467_s27 }
   0xb   :  { %p474_p6 = por %p473_p5, %p472_p4 }
   0xd   :  { %p475_p7 = pnand %p474_p6, %p468_p3 }
   0xf   :  { %478 = shalt.err (!%p475_p7)
}
  0x10   :  { %s528_s28 = smov 128   ;;  %s529_s29 = smov 8  }
  0x11   :  { %33 = dma.hbm_to_vmem [thread:$0]  %s623_s1, 640, %s28_s19, [#allocation5], %s528_s28, %s528_s28, %s529_s29  }
  0x12   :  { %s530_s7 = smov [#allocation2]   ;;  %s531_s9 = smov [#allocation6]  }
  0x13   :  { %s18_s8 = sshll.u32 %s530_s7, 4  ;;  %s41_s10 = sshll.u32 %s531_s9, 4  ;;  %s19_s8 = int_to_ptr.vmem [resolvable:$true] %s18_s8  ;;  %s42_s10 = int_to_ptr.vmem [resolvable:$true] %s41_s10 }
  0x14   :  { %s479_s13 = scalar_lea.hbm %s622_s0, 128 }
  0x15   :  { %p480_p8 = scmp.ne.s32.totalorder %s622_s0, %s479_s13  ;;  %p483_p9 = scmp.lt.u32.totalorder %s479_s13, %s622_s0 }
  0x17   :  { %p485_p10 = pnand %p483_p9, %p480_p8 }
  0x19   :  { %488 = shalt.err (!%p485_p10)
}
  0x1a   :  { %s489_s1 = scalar_lea.vmem %s19_s8, 128  ;;  %p494_p12 = scmp.lt.s32.totalorder %s19_s8, %s19_s8 }
  0x1b   :  { %p490_p11 = scmp.ne.s32.totalorder %s19_s8, %s489_s1  ;;  %p495_p13 = scmp.lt.s32.totalorder %s489_s1, %s489_s1 }
  0x1d   :  { %p496_p0 = por %p495_p13, %p494_p12 }
  0x1f   :  { %p497_p1 = pnand %p496_p0, %p490_p11 }
  0x21   :  { %500 = shalt.err (!%p497_p1)
}
  0x22   :  { %21 = dma.hbm_to_vmem [thread:$0]  %s622_s0, 128, %s19_s8, [#allocation3]  }
  0x23   :  { %s501_s22 = scalar_lea.hbm %s625_s3, 1536 }
  0x24   :  { %p502_p2 = scmp.ne.s32.totalorder %s625_s3, %s501_s22  ;;  %p505_p3 = scmp.lt.u32.totalorder %s501_s22, %s625_s3 }
  0x26   :  { %p507_p4 = pnand %p505_p3, %p502_p2 }
  0x28   :  { %510 = shalt.err (!%p507_p4)
}
  0x29   :  { %s511_s27 = scalar_lea.vmem %s42_s10, 1536  ;;  %p516_p6 = scmp.lt.s32.totalorder %s42_s10, %s42_s10 }
  0x2a   :  { %p512_p5 = scmp.ne.s32.totalorder %s42_s10, %s511_s27  ;;  %p517_p7 = scmp.lt.s32.totalorder %s511_s27, %s511_s27 }
  0x2c   :  { %p518_p8 = por %p517_p7, %p516_p6 }
  0x2e   :  { %p519_p9 = pnand %p518_p8, %p512_p5 }
  0x30   :  { %522 = shalt.err (!%p519_p9)
}
  0x31   :  { %s532_s0 = smov 384   ;;  %s533_s28 = smov 24  }
  0x32   :  { %47 = dma.hbm_to_vmem [thread:$0]  %s625_s3, 1536, %s42_s10, [#allocation5], %s532_s0, %s532_s0, %s533_s28  }
  0x33   :  { %523 = dma.done.wait [#allocation3], 128  }
  0x34   :  { %524 = vsyncadd [#allocation3], 4294967168 }
  0x35   :  { %525 = dma.done.wait [#allocation5], 2176  }
  0x36   :  { %526 = vsyncadd [#allocation5], 4294965120  ;;  %v534_v0 = vmov 0.0|0.0   ;;  %vm535_vm0 = vmmov 0   ;;  %v536_v1 = vmov 0.0   ;;  %v60_v2 = vld [vmem:[#allocation4] sm:$0xff]  ;;  %v165_v33 = vlaneseq }
  0x37   :  { %419 = vmatprep.subr.bf16.mxu0 %v534_v0  ;;  %405 = vmatprep.mubr.msk.f32.mxu0 %vm535_vm0, %v536_v1  ;;  %v61_v3 = vld [vmem:[#allocation4 + $0x8] sm:$0xff]  ;;  %v62_v4 = vld [vmem:[#allocation4 + $0x10] sm:$0xff]  ;;  %v63_v6 = vld [vmem:[#allocation4 + $0x18] sm:$0xff]  ;;  %vm76_vm1 = vcmask 1043456   ;;  %vm72_vm2 = vcmask 293888   ;;  %vm180_vm3 = vcmask 261120  }
  0x38   :  { %248 = vmatprep.mubr.f32.mxu1 %v536_v1  ;;  %v420_v5 = vpack.c.bf16 %v61_v3, %v60_v2  ;;  %v152_v7 = vld [vmem:[#allocation6 + $0x8] sm:$0xff]  ;;  %v155_v8 = vld [vmem:[#allocation6 + $0x20] sm:$0xff]  ;;  %v423_v10 = vpack.c.bf16 %v63_v6, %v62_v4  ;;  %v154_v12 = vld [vmem:[#allocation6 + $0x18] sm:$0xff]  ;;  %v166_v34 = vshrl.u32 %v165_v33, 7  ;;  %v326_v38 = vand.u32 127, %v165_v33 }
  0x39   :  { %v151_v9 = vld [vmem:[#allocation6] sm:$0xff]  ;;  %v425_v11 = vpack.c.bf16 %v155_v8, %v152_v7  ;;  %v64_v14 = vld [vmem:[#allocation4 + $0x20] sm:$0xf]  ;;  %v59_v15 = vld [vmem:[#allocation2] sm:$0xff] }
  0x3a   :  { %421 = vmatpush3.bf16.msra.mxu0 %v420_v5  ;;  %v427_v13 = vpack.c.bf16 %v154_v12, %v151_v9  ;;  %v158_v16 = vld [vmem:[#allocation6 + $0x38] sm:$0xff]  ;;  %v161_v17 = vld [vmem:[#allocation6 + $0x50] sm:$0xff]  ;;  %v160_v20 = vld [vmem:[#allocation6 + $0x48] sm:$0xff]  ;;  %v167_v35 = vsub.s32 0, %v166_v34  ;;  %v171_v37 = vsub.s32 1, %v166_v34  ;;  %vm327_vm4 = vcmp.lt.s32.totalorder %v326_v38, 20 }
  0x3b   :  { %422 = vmatprep.subr.bf16.mxu0 %v534_v0  ;;  %426 = vmatprep.subr.bf16.mxu1 %v425_v11  ;;  %v429_v18 = vpack.c.bf16 %v161_v17, %v158_v16  ;;  %v157_v19 = vld [vmem:[#allocation6 + $0x30] sm:$0xff]  ;;  %v377_v22 = vld [vmem:[%s624_s2] ss:$0 sm:$0xff]  ;;  %v156_v24 = vld [vmem:[#allocation6 + $0x28] sm:$0xff]  ;;  %v175_v44 = vsub.s32 2, %v166_v34  ;;  %vm343_vm6 = vcmp.ge.s32.totalorder %v326_v38, 53 }
  0x3c   :  { %428 = vmatpush1.bf16.msra.mxu1 %v427_v13  ;;  %v431_v21 = vpack.c.bf16 %v160_v20, %v157_v19  ;;  %v153_v23 = vld [vmem:[#allocation6 + $0x10] sm:$0xff]  ;;  %v159_v30 = vld [vmem:[#allocation6 + $0x40] sm:$0xff]  ;;  %v162_v31 = vld [vmem:[#allocation6 + $0x58] sm:$0xff]  ;;  %v342_v59 = vadd.s32 128, %v326_v38 }
  0x3d   :  { %430 = vmatprep.subr.bf16.mxu1 %v429_v18  ;;  %v434_v28 = vpack.c.bf16 %v156_v24, %v153_v23  ;;  %v437_v32 = vpack.c.bf16 %v162_v31, %v159_v30  ;;  %v163_v36 = vld [vmem:[%s626_s4] sm:$0x7] }
  0x3e   :  { %424 = vmatpush3.bf16.msra.mxu0 %v423_v10  ;;  %v168_v39 = vrot.slane %v163_v36, %v167_v35  ;;  %v172_v40 = vrot.slane %v163_v36, %v171_v37  ;;  %v176_v48 = vrot.slane %v163_v36, %v175_v44  ;;  %vm346_vm8 = vcmp.lt.s32.totalorder %v342_v59, 213 }
  0x3f   :  { %403 = vmatprep.subr.mxu0 %v536_v1 }
  0x40   :  { %432 = vmatpush1.bf16.msra.mxu1 %v431_v21 }
  0x41   :  { %433 = vmatprep.subr.bf16.mxu1 %v534_v0 }
  0x42   :  { %404 = vmatpush3.msk.msra.mxu0 %vm76_vm1, %v64_v14 }
  0x43   :  { %406 = vmatmul.mubr.msk.f32.vlgmr.msra.gmra.mrb[0].mxu0 %vm72_vm2, %v59_v15 }
 0x116   :  { %v146_v25 = vpop.f32.mrb[0].mxu0 }
 0x117   :  { %v147_v26 = vadd.f32 %v377_v22, %v146_v25  ;;  %v407_v27 = vpop.f32.mrb[1].mxu0 }
 0x119   :  { %v150_v29 = vmax.f32 %v147_v26, 0.0 }
 0x11b   :  { %380 = vmatmul.mubr.msk.f32.vlgmr.msra.gmra.mrb[0].mxu1 %vm180_vm3, %v150_v29 }
 0x11c   :  { %435 = vmatpush3.bf16.msra.mxu1 %v434_v28  ;;  %416 = vmatprep.mubr.msk.f32.mxu1 %vm535_vm0, %v536_v1 }
 0x11d   :  { %436 = vmatprep.subr.bf16.mxu1 %v534_v0 }
 0x120   :  { %438 = vmatpush3.bf16.msra.mxu1 %v437_v32 }
 0x123   :  { %417 = vmatmul.mubr.msk.f32.vlgmr.msra.gmra.mrb[2].mxu1 %vm180_vm3, %v150_v29 }
 0x1ee   :  { %v250_v41 = vpop.f32.mrb[0].mxu1 }
 0x1ef   :  { %v251_v42 = vadd.f32 %v250_v41, %v168_v39  ;;  %v252_v43 = vpop.f32.mrb[1].mxu1 }
 0x1f0   :  { %v253_v45 = vadd.f32 %v252_v43, %v172_v40 }
 0x1f1   :  { %v330_v46 = vsel %vm327_vm4, %v251_v42, -1e+30 }
 0x1f2   :  { %v351_v47 = vmin.f32 %v253_v45, 0.0  ;;  %331 = vmax.xlane.f32.xlu0 %v330_v46  ;;  %vm349_vm5 = vcmp.gt.f32.partialorder %v253_v45, 0.0 }
 0x1f4   :  { %v353_v49 = vmul.f32 1.442695, %v351_v47 }
 0x1f6   :  { %449 = vpow2.f32 %v353_v49  ;;  %v321_v50 = vpop.f32.mrb[2].mxu1 }
 0x1f7   :  { %v322_v51 = vadd.f32 %v321_v50, %v176_v48  ;;  %v418_v52 = vpop.f32.mrb[3].mxu1 }
 0x1f9   :  { %v352_v53 = vmin.f32 %v322_v51, 0.0  ;;  %vm350_vm7 = vcmp.gt.f32.partialorder %v322_v51, 0.0 }
 0x1fb   :  { %v355_v54 = vmul.f32 1.442695, %v352_v53 }
 0x1fd   :  { %451 = vpow2.f32 %v355_v54 }
 0x200   :  { %v450_v55 = vpop.eup %449 }
 0x201   :  { %v382_v56 = vadd.f32 -1.0, %v450_v55 }
 0x203   :  { %v359_v57 = vsel %vm349_vm5, %v253_v45, %v382_v56 }
 0x204   :  { %v361_v58 = vadd.f32 1.000001, %v359_v57 }
 0x206   :  { %v367_v60 = vsel %vm343_vm6, %v361_v58, %v253_v45 }
 0x207   :  { %v452_v61 = vpop.eup %451  ;;  %369 = vst [vmem:[%s627_s5 + $0x8] sm:$0xff] %v367_v60 }
 0x208   :  { %v383_v62 = vadd.f32 -1.0, %v452_v61 }
 0x20a   :  { %v360_v63 = vsel %vm350_vm7, %v322_v51, %v383_v62 }
 0x20b   :  { %v362_v0 = vadd.f32 1.000001, %v360_v63 }
 0x20d   :  { %v368_v1 = vsel %vm346_vm8, %v362_v0, %v322_v51 }
 0x20e   :  { %370 = vst [vmem:[%s627_s5 + $0x10] sm:$0xff] %v368_v1 }
 0x27f   :  { %v332_v2 = vpop.xlane.xlu0 %331 }
 0x280   :  { %v333_v3 = vsub.f32 %v330_v46, %v332_v2 }
 0x282   :  { %v334_v4 = vmul.f32 1.442695, %v333_v3 }
 0x284   :  { %453 = vpow2.f32 %v334_v4 }
 0x28e   :  { %v454_v5 = vpop.eup %453 }
 0x28f   :  { %336 = vadd.xlane.f32.xlu0 %v454_v5 }
 0x31c   :  { %v337_v6 = vpop.xlane.xlu0 %336 }
 0x31d   :  { %455 = vrcp.f32 %v337_v6 }
 0x327   :  { %v456_v7 = vpop.eup %455 }
 0x328   :  { %v339_v8 = vmul.f32 %v456_v7, %v454_v5 }
 0x32a   :  { %v340_v9 = vsel %vm327_vm4, %v339_v8, %v251_v42 }
 0x32b   :  { %341 = vst [vmem:[%s627_s5] sm:$0xff] %v340_v9 }
 0x32c   :  { %375 = vsyncpa [#allocation3], 1 }
 0x32d   :  { %376 = vsyncpa [#allocation5], 1 }

</bundles_post_ra>
